<compile_context>
chip_gen: v5e
topology: v5e:2x2
jax: 0.10.0
libtpu: 0.0.40
codegen_flags: <defaults>
</compile_context>

<pallas_src>
import jax
import jax.numpy as jnp
from jax.experimental import pallas as pl
from jax.experimental.pallas import tpu as pltpu


def gate_kernel(x_ref, b_ref, o_ref):
    # |x| + bias -> sigmoid, computed in f32 (cast on load / store).
    # b_ref block is (1, tf) and sublane-broadcasts over the (tb, tf) x block.
    h = jnp.abs(x_ref[...]).astype(jnp.float32) + b_ref[...].astype(jnp.float32)
    # sigmoid(h) == 0.5 * (1 + tanh(0.5 * h)): one EUP transcendental per element.
    o_ref[...] = (0.5 * (jnp.tanh(0.5 * h) + 1.0)).astype(o_ref.dtype)


def _default_target_block_bytes():
    """Generation-dependent block-size target (conservative fallback)."""
    try:
        kind = jax.devices()[0].device_kind.lower()
    except Exception:
        return 2 << 20
    if "v7" in kind:
        return 8 << 20   # 3.2 TB/s HBM per TC -> bigger blocks to hide step overhead
    if "v6" in kind:
        return 4 << 20   # 128 MiB VMEM, 32 MiB default scoped limit: plenty of room
    return 2 << 20       # v5e (16 MiB default scoped VMEM) and anything unknown


def _choose_tiles(B, F, itemsize, target_block_bytes):
    """Pick (tb, tf) so tb*tf*itemsize ~= target, respecting (sublane, 128) tiling."""
    sublane = {4: 8, 2: 16, 1: 32}.get(itemsize, 8)

    # Whole array fits in one block.
    if B * F * itemsize <= target_block_bytes:
        return B, F

    row_bytes = F * itemsize
    if F % 128 != 0 or F <= 128 or sublane * row_bytes <= target_block_bytes:
        # Keep full feature rows; split along batch only.
        tf = F
        tb = max(1, target_block_bytes // row_bytes)
        if tb >= B:
            tb = B
        else:
            tb = max(min(sublane, B), (tb // sublane) * sublane)
        return tb, tf

    # Feature axis too wide for a sublane-worth of rows: pin tb to the sublane
    # minimum and derive tf from it (this is the fix for the old ~8x blowup).
    tb = min(sublane, B)
    tf = ((target_block_bytes // (max(tb, 1) * itemsize)) // 128) * 128
    tf = max(128, min(tf, (F // 128) * 128))
    return tb, tf


def gate_forward(x, bias, *, target_block_bytes=None, vmem_limit_bytes=None):
    """sigmoid(|x| + bias).

    x:    (B, D, D) float
    bias: (D, D), broadcast over the batch dim.
    """
    B, D1, D2 = x.shape
    assert bias.shape == (D1, D2)
    F = D1 * D2
    itemsize = jnp.dtype(x.dtype).itemsize

    if target_block_bytes is None:
        target_block_bytes = _default_target_block_bytes()

    # Lane-dense 2D layout: last dim = flattened (D, D).
    x2 = x.reshape(B, F)
    b2 = bias.reshape(1, F)

    tb, tf = _choose_tiles(B, F, itemsize, target_block_bytes)
    grid_b = pl.cdiv(B, tb)
    grid_f = pl.cdiv(F, tf)

    compiler_kwargs = dict(dimension_semantics=("parallel", "parallel"))
    if vmem_limit_bytes is None:
        # x + out double-buffered, plus the small bias block; add headroom and
        # only override the default scoped limit when actually needed.
        needed = 4 * tb * tf * itemsize + 2 * tf * itemsize + (2 << 20)
        if needed > (16 << 20):
            vmem_limit_bytes = min(needed, 48 << 20)
    if vmem_limit_bytes is not None:
        compiler_kwargs["vmem_limit_bytes"] = int(vmem_limit_bytes)

    # Grid: feature axis outer, batch inner -> the bias block index is constant
    # across consecutive steps, so it is DMA'd only grid_f times.
    out2 = pl.pallas_call(
        gate_kernel,
        out_shape=jax.ShapeDtypeStruct((B, F), x.dtype),
        grid_spec=pltpu.PrefetchScalarGridSpec(
            num_scalar_prefetch=0,
            grid=(grid_f, grid_b),
            in_specs=[
                pl.BlockSpec((tb, tf), lambda j, i: (i, j)),
                pl.BlockSpec((1, tf), lambda j, i: (0, j)),
            ],
            out_specs=pl.BlockSpec((tb, tf), lambda j, i: (i, j)),
        ),
        compiler_params=pltpu.CompilerParams(**compiler_kwargs),
    )(x2, b2)

    return out2.reshape(B, D1, D2)


if __name__ == "__main__":
    key = jax.random.PRNGKey(0)
    k_x, k_b = jax.random.split(key)

    B = 2      # batch
    D = 32     # input_dim  (D*D = 1024 = 8*128 -> lane-dense after flattening)

    x = jax.random.normal(k_x, (B, D, D), dtype=jnp.float32)
    # Deterministic stand-in for nn.Parameter(torch.randn(input_dim, input_dim)).
    bias = jax.random.normal(k_b, (D, D), dtype=jnp.float32)

    out = gate_forward(x, bias)
    out = jax.block_until_ready(out)

    # Reference check in plain JAX.
    ref = jax.nn.sigmoid(jnp.abs(x) + bias[None, :, :])
    assert out.shape == (B, D, D)
    assert jnp.allclose(out, ref, atol=1e-5, rtol=1e-5)

    print("KERNEL_OK")
</pallas_src>

<mosaic_0001>
module attributes {stable_mosaic.version = 11 : i64} {
  func.func @gate_kernel(%arg0: i32, %arg1: i32, %arg2: memref<2x1024xf32, #tpu.memory_space<vmem>>, %arg3: memref<1x1024xf32, #tpu.memory_space<vmem>>, %arg4: memref<2x1024xf32, #tpu.memory_space<vmem>>) attributes {dimension_semantics = [#tpu.dimension_semantics<parallel>, #tpu.dimension_semantics<parallel>], iteration_bounds = array<i64: 1, 1>, scalar_prefetch = 0 : i64, scratch_operands = 0 : i64, tpu.core_type = #tpu.core_type<tc>, window_params = [{transform_indices = @transform_0, window_bounds = array<i64: 2, 1024>}, {transform_indices = @transform_1, window_bounds = array<i64: 1, 1024>}, {transform_indices = @transform_2, window_bounds = array<i64: 2, 1024>}]} {
    %c0 = arith.constant 0 : index
    %c0_0 = arith.constant 0 : index
    %0 = vector.load %arg2[%c0, %c0_0] : memref<2x1024xf32, #tpu.memory_space<vmem>>, vector<2x1024xf32>
    %1 = math.absf %0 : vector<2x1024xf32>
    %c0_1 = arith.constant 0 : index
    %c0_2 = arith.constant 0 : index
    %2 = vector.load %arg3[%c0_1, %c0_2] : memref<1x1024xf32, #tpu.memory_space<vmem>>, vector<1x1024xf32>
    %3 = vector.broadcast %2 : vector<1x1024xf32> to vector<2x1024xf32>
    %4 = arith.addf %1, %3 : vector<2x1024xf32>
    %cst = arith.constant 5.000000e-01 : f32
    %5 = vector.broadcast %cst : f32 to vector<2x1024xf32>
    %6 = arith.mulf %5, %4 : vector<2x1024xf32>
    %7 = math.tanh %6 : vector<2x1024xf32>
    %cst_3 = arith.constant 1.000000e+00 : f32
    %8 = vector.broadcast %cst_3 : f32 to vector<2x1024xf32>
    %9 = arith.addf %7, %8 : vector<2x1024xf32>
    %cst_4 = arith.constant 5.000000e-01 : f32
    %10 = vector.broadcast %cst_4 : f32 to vector<2x1024xf32>
    %11 = arith.mulf %10, %9 : vector<2x1024xf32>
    %c0_5 = arith.constant 0 : index
    %c0_6 = arith.constant 0 : index
    %12 = vector.load %arg4[%c0_5, %c0_6] : memref<2x1024xf32, #tpu.memory_space<vmem>>, vector<2x1024xf32>
    tpu.vector_store %arg4[%c0_5, %c0_6], %11 {strides = array<i32>} : memref<2x1024xf32, #tpu.memory_space<vmem>>, vector<2x1024xf32>,
    return
  }
  func.func @transform_0(%arg0: i32, %arg1: i32) -> (i32, i32) {
    %c0_i32 = arith.constant 0 : i32
    return %arg1, %arg0 : i32, i32
  }
  func.func @transform_1(%arg0: i32, %arg1: i32) -> (i32, i32) {
    %c0_i32 = arith.constant 0 : i32
    %c0_i32_0 = arith.constant 0 : i32
    return %c0_i32, %arg0 : i32, i32
  }
  func.func @transform_2(%arg0: i32, %arg1: i32) -> (i32, i32) {
    %c0_i32 = arith.constant 0 : i32
    return %arg1, %arg0 : i32, i32
  }
}

</mosaic_0001>

<bundles_post_ra>
// kernel: tpu_custom_call.1
= control target key start
LH: loop header
LB: loop body
LE: loop exit
PB: predicated region body
PF: predicated region fallthrough
CT: control target
= control target key end

     0   :  { %7 = vsyncpa [#allocation3], 0  ;;  %s217_s0 = inlined_call_operand.hbm [shape: f32[2,1024], index: 0, kind: input, shape index: {}]   ;;  %s218_s1 = inlined_call_operand.hbm [shape: f32[1,1024], index: 1, kind: input, shape index: {}]   ;;  %s219_s2 = inlined_call_operand.hbm [shape: f32[2,1024], index: 2, kind: output, shape index: {}]  }
   0x1   :  { %8 = vsyncpa [#allocation6], 0 }
   0x2   :  { %9 = vsyncpa [#allocation4], 0  ;;  %s15_s11 = sshll.u32 %s217_s0, 4  ;;  %s186_s12 = smov [#allocation2]   ;;  %s16_s11 = int_to_ptr.hbm [resolvable:$true] %s15_s11 }
   0x3   :  { %s17_s13 = sshll.u32 %s186_s12, 4  ;;  %s26_s16 = sshll.u32 %s218_s1, 4  ;;  %s18_s13 = int_to_ptr.vmem [resolvable:$true] %s17_s13  ;;  %s27_s16 = int_to_ptr.hbm [resolvable:$true] %s26_s16 }
   0x4   :  { %20 = dma.hbm_to_vmem [thread:$0]  %s16_s11, 256, %s18_s13, [#allocation3]  }
   0x5   :  { %s187_s17 = smov [#allocation5]  }
   0x6   :  { %s28_s18 = sshll.u32 %s187_s17, 4  ;;  %s29_s18 = int_to_ptr.vmem [resolvable:$true] %s28_s18 }
   0x7   :  { %31 = dma.hbm_to_vmem [thread:$0]  %s27_s16, 128, %s29_s18, [#allocation6]  }
   0x8   :  { %180 = dma.done.wait [#allocation3], 256  }
   0x9   :  { %181 = vsyncadd [#allocation3], 4294967040 }
   0xa   :  { %182 = dma.done.wait [#allocation6], 128  }
   0xb   :  { %183 = vsyncadd [#allocation6], 4294967168  ;;  %v44_v0 = vld [vmem:[#allocation5] sm:$0xff]  ;;  %v40_v1 = vld [vmem:[#allocation2] sm:$0xff]  ;;  %vm60_vm0 = vcmask 1041408   ;;  %vm62_vm1 = vcmask 1045508  }
   0xc   :  { %v46_v2 = vperm.slane %v44_v0, 0  ;;  %v47_v3 = vperm.slane %v44_v0, 1  ;;  %v48_v4 = vperm.slane %v44_v0, 2  ;;  %v49_v5 = vperm.slane %v44_v0, 3  ;;  %v41_v6 = vld [vmem:[#allocation2 + $0x8] sm:$0xff]  ;;  %s188_s0 = smov [#allocation7]  }
   0xd   :  { %v50_v7 = vperm.slane %v44_v0, 4  ;;  %v51_v8 = vperm.slane %v44_v0, 5  ;;  %v52_v11 = vperm.slane %v44_v0, 6  ;;  %v53_v12 = vperm.slane %v44_v0, 7  ;;  %s88_s1 = sshll.u32 %s188_s0, 4  ;;  %s90_s21 = sshll.u32 %s219_s2, 4  ;;  %s89_s1 = int_to_ptr.vmem [resolvable:$true] %s88_s1  ;;  %s91_s21 = int_to_ptr.hbm [resolvable:$true] %s90_s21 }
   0xe   :  { %v54_v9 = vrot.slane %v47_v3, 6  ;;  %v55_v10 = vrot.slane %v48_v4, 4  ;;  %v42_v13 = vand.u32 2147483647, %v40_v1  ;;  %v56_v14 = vrot.slane %v49_v5, 2 }
   0xf   :  { %vm64_vm2 = vcmask 1043456   ;;  %v57_v15 = vrot.slane %v51_v8, 6  ;;  %v43_v17 = vand.u32 2147483647, %v41_v6  ;;  %v58_v18 = vrot.slane %v52_v11, 4 }
  0x10   :  { %v61_v16 = vsel %vm60_vm0, %v46_v2, %v54_v9  ;;  %v59_v19 = vrot.slane %v53_v12, 2  ;;  %v63_v20 = vsel %vm62_vm1, %v55_v10, %v56_v14 }
  0x11   :  { %v66_v21 = vsel %vm60_vm0, %v50_v7, %v57_v15  ;;  %v65_v22 = vsel %vm64_vm2, %v61_v16, %v63_v20 }
  0x12   :  { %v67_v23 = vsel %vm62_vm1, %v58_v18, %v59_v19  ;;  %v71_v24 = vadd.f32 %v65_v22, %v42_v13 }
  0x13   :  { %v68_v25 = vsel %vm64_vm2, %v66_v21, %v67_v23 }
  0x14   :  { %v72_v26 = vadd.f32 %v68_v25, %v43_v17  ;;  %v73_v27 = vmul.f32 0.5, %v71_v24 }
  0x16   :  { %v74_v28 = vmul.f32 0.5, %v72_v26  ;;  %104 = vtanh.f32 %v73_v27 }
  0x18   :  { %106 = vtanh.f32 %v74_v28 }
  0x1c   :  { %v105_v29 = vpop.eup %104 }
  0x1d   :  { %v77_v31 = vadd.f32 1.0, %v105_v29 }
  0x1e   :  { %v107_v30 = vpop.eup %106 }
  0x1f   :  { %v78_v32 = vadd.f32 1.0, %v107_v30  ;;  %v79_v33 = vmul.f32 0.5, %v77_v31 }
  0x21   :  { %v80_v34 = vmul.f32 0.5, %v78_v32  ;;  %81 = vst [vmem:[#allocation7] sm:$0xff] %v79_v33 }
  0x23   :  { %82 = vst [vmem:[#allocation7 + $0x8] sm:$0xff] %v80_v34 }
  0x24   :  { %93 = dma.vmem_to_hbm [thread:$0]  %s89_s1, 256, %s91_s21, [#allocation4]  }
  0x25   :  { %184 = dma.done.wait [#allocation4], 256  }
  0x26   :  { %185 = vsyncadd [#allocation4], 4294967040 }
  0x27   :  { %98 = vsyncpa [#allocation3], 1 }
  0x28   :  { %99 = vsyncpa [#allocation6], 1 }
  0x29   :  { %100 = vsyncpa [#allocation4], 1 }

</bundles_post_ra>
